<compile_context>
chip_gen: v6e
topology: v6e:2x2x1
jax: 0.10.0
libtpu: 0.0.40
codegen_flags: <defaults>
</compile_context>

<pallas_src>
import functools

import jax
import jax.numpy as jnp
from jax.experimental import pallas as pl
from jax.experimental.pallas import tpu as pltpu

BN_EPS = 1e-5


# ----------------------------------------------------------------------------
# Fused 1x1 conv with pre-folded SE gate + bias.
#   x tile:(Cin, TS)   w:(Cout, Cin)=y*W   b:(Cout, 1)=y*bias   ->  o:(Cout, TS)
# ----------------------------------------------------------------------------
def _conv1x1_gate_kernel(x_ref, w_ref, b_ref, o_ref, *, compute_dtype):
    x = x_ref[...]                      # (Cin, TS)  spatial on lanes
    if compute_dtype is not None and x.dtype != compute_dtype:
        x = x.astype(compute_dtype)     # only fires if x arrives wider than needed
    acc = jnp.dot(w_ref[...], x, preferred_element_type=jnp.float32)   # MXU, (Cout, TS)
    o_ref[...] = (acc + b_ref[...]).astype(o_ref.dtype)                # bias (already *y)


def _pick_ts(S, Cin, Cout, in_itemsize, out_itemsize, batch,
             max_ts=4096, vmem_budget=16 << 20):
    """Lane-dense spatial tile (multiple of 128) for a cdiv grid.

    Keeps the double-buffered in+out tiles under `vmem_budget` and guarantees
    at least two grid steps when the spatial axis is splittable (v7x megacore).
    """
    per_lane = 2 * (Cin * in_itemsize + Cout * out_itemsize)   # double-buffered
    ts_budget = max(128, (vmem_budget // per_lane) // 128 * 128)
    s_pad = pl.cdiv(S, 128) * 128                              # lane-dense upper bound
    ts = max(128, min(max_ts, s_pad, ts_budget))
    # v7x megacore: make sure both TensorCores get work when possible.
    while batch * pl.cdiv(S, ts) < 2 and ts > 128:
        ts -= 128
    # TODO(synk): if B == 1 and S <= 128 the grid has a single step (one idle
    # TC on v7x); a Cout-block grid axis could split it, but the work is tiny.
    return ts


def conv1x1_gate(x_bcs, w_scaled, bias_scaled, *, compute_dtype=None,
                 out_dtype=None, ts=None):
    """x_bcs:(B,Cin,S), w_scaled:(B,Cout,Cin), bias_scaled:(B,Cout,1) -> (B,Cout,S)."""
    B, Cin, S = x_bcs.shape
    Cout = w_scaled.shape[1]
    out_dtype = jnp.dtype(out_dtype) if out_dtype is not None else x_bcs.dtype
    if ts is None:
        ts = _pick_ts(S, Cin, Cout, x_bcs.dtype.itemsize, out_dtype.itemsize, B)
    grid = (B, pl.cdiv(S, ts))          # ragged last block masked by Pallas

    kernel = functools.partial(_conv1x1_gate_kernel, compute_dtype=compute_dtype)
    cost = pl.CostEstimate(
        flops=2 * B * S * Cin * Cout,
        transcendentals=0,
        bytes_accessed=int(
            B * S * Cin * x_bcs.dtype.itemsize              # x
            + B * Cout * Cin * w_scaled.dtype.itemsize      # per-batch scaled weight
            + B * Cout * bias_scaled.dtype.itemsize         # per-batch scaled bias
            + B * S * Cout * out_dtype.itemsize             # out
        ),
    )

    return pl.pallas_call(
        kernel,
        out_shape=jax.ShapeDtypeStruct((B, Cout, S), out_dtype),
        grid_spec=pl.GridSpec(
            grid=grid,
            in_specs=[
                # activation tile: channels on sublanes, spatial on lanes
                pl.BlockSpec((pl.Squeezed(), Cin, ts), lambda b, s: (b, 0, s)),
                # per-batch gate-scaled weight: resident within a batch
                pl.BlockSpec((pl.Squeezed(), Cout, Cin), lambda b, s: (b, 0, 0)),
                # per-batch gate-scaled bias column
                pl.BlockSpec((pl.Squeezed(), Cout, 1), lambda b, s: (b, 0, 0)),
            ],
            out_specs=pl.BlockSpec((pl.Squeezed(), Cout, ts), lambda b, s: (b, 0, s)),
        ),
        compiler_params=pltpu.CompilerParams(
            dimension_semantics=("parallel", "parallel"),
            vmem_limit_bytes=40 * 1024 * 1024,   # safe on v7x (64 MiB/TC) and v5e/v6e
        ),
        cost_estimate=cost,
    )(x_bcs, w_scaled, bias_scaled)


# ----------------------------------------------------------------------------
# SELikeModule: parameter container + forward wrapper.
# ----------------------------------------------------------------------------
def init_params(key, in_channel, feat_channel, intrinsic_channel):
    k = jax.random.split(key, 4)
    return {
        # Conv2d(in, feat, 1): PyTorch weight (Cout, Cin, 1, 1) -> (Cout, Cin)
        "w_conv": jax.random.normal(k[0], (feat_channel, in_channel), jnp.float32) * 0.05,
        "b_conv": jax.random.normal(k[1], (feat_channel,), jnp.float32) * 0.05,
        # BatchNorm1d(intrinsic_channel), eval-mode running stats + affine
        "bn_running_mean": jnp.zeros((1, intrinsic_channel), jnp.float32),
        "bn_running_var": jnp.ones((1, intrinsic_channel), jnp.float32),
        "bn_gamma": jnp.ones((1, intrinsic_channel), jnp.float32),
        "bn_beta": jnp.zeros((1, intrinsic_channel), jnp.float32),
        # Linear(intrinsic_channel, feat_channel): weight (Cout, Cin) -> (Cin, Cout)
        "w_fc": jax.random.normal(k[2], (intrinsic_channel, feat_channel), jnp.float32) * 0.1,
        "b_fc": jax.random.normal(k[3], (1, feat_channel), jnp.float32) * 0.1,
    }


def _se_gate(params, cam_params):
    """BatchNorm1d (eval) -> Linear -> Sigmoid.  Tiny (B x 33 x Cout): plain jnp."""
    inv_std = jax.lax.rsqrt(params["bn_running_var"] + BN_EPS)
    norm = (cam_params - params["bn_running_mean"]) * inv_std * params["bn_gamma"] \
        + params["bn_beta"]
    return jax.nn.sigmoid(norm @ params["w_fc"] + params["b_fc"])   # (B, Cout)


@functools.partial(jax.jit, static_argnames=("bf16_matmul", "out_dtype"))
def se_like_forward(params, x_nchw, cam_params, *, bf16_matmul=True, out_dtype=None):
    """NCHW in, NCHW out — no transposes, only free reshapes.

    x_nchw may be f32 or bf16; supply bf16 to halve the input HBM stream.
    out_dtype=jnp.bfloat16 halves the (dominant) output HBM stream.
    """
    B, Cin, H, W = x_nchw.shape
    Cout = params["w_conv"].shape[0]
    x_bcs = x_nchw.reshape(B, Cin, H * W)

    # Fold the SE gate and the conv bias into a per-batch weight / bias:
    #   (W @ x + b) * y  ==  (y*W) @ x + (y*b)
    y = _se_gate(params, cam_params).astype(jnp.float32)                 # (B, Cout)
    w_scaled = y[:, :, None] * params["w_conv"][None]                    # (B, Cout, Cin)
    bias_scaled = (y * params["b_conv"][None, :])[:, :, None]            # (B, Cout, 1)

    compute_dtype = jnp.bfloat16 if bf16_matmul else None
    if bf16_matmul:
        w_scaled = w_scaled.astype(jnp.bfloat16)   # pre-cast: no per-step VPU cast

    out_bcs = conv1x1_gate(x_bcs, w_scaled, bias_scaled,
                           compute_dtype=compute_dtype, out_dtype=out_dtype)
    return out_bcs.reshape(B, Cout, H, W)


def _reference(params, x_nchw, cam_params):
    """Pure-JAX reference of the PyTorch forward (eval-mode BN)."""
    Cout = params["w_conv"].shape[0]
    x_conv = jnp.einsum("bchw,fc->bfhw", x_nchw, params["w_conv"]) \
        + params["b_conv"].reshape(1, Cout, 1, 1)
    norm = (cam_params - params["bn_running_mean"]) * jax.lax.rsqrt(
        params["bn_running_var"] + BN_EPS) * params["bn_gamma"] + params["bn_beta"]
    y = jax.nn.sigmoid(norm @ params["w_fc"] + params["b_fc"])
    return x_conv * y[:, :, None, None]


if __name__ == "__main__":
    # small shapes consistent with the module: Conv2d(in, feat, 1), fc(intrinsic -> feat)
    B, IN_CH, FEAT_CH, INTR_CH, H, W = 2, 64, 128, 33, 16, 16

    key = jax.random.PRNGKey(0)
    kp, kx, kc = jax.random.split(key, 3)
    params = init_params(kp, IN_CH, FEAT_CH, INTR_CH)
    x = jax.random.normal(kx, (B, IN_CH, H, W), jnp.float32)
    cam = jax.random.normal(kc, (B, INTR_CH), jnp.float32)

    ref = _reference(params, x, cam)

    # Exact path: f32 activation, f32 accumulation, f32 output.
    out_f32 = jax.block_until_ready(
        se_like_forward(params, x, cam, bf16_matmul=False, out_dtype=jnp.float32))
    assert out_f32.shape == (B, FEAT_CH, H, W)
    assert jnp.allclose(out_f32, ref, atol=1e-4, rtol=1e-4), \
        f"f32 max abs err {jnp.max(jnp.abs(out_f32 - ref))}"

    # Fast path: bf16 activation in HBM (half-width input DMA), bf16 MXU operands
    # with f32 accumulation, bf16 output (halves the dominant HBM stream).
    x_bf16 = x.astype(jnp.bfloat16)
    ref_bf16_in = _reference(params, x_bf16.astype(jnp.float32), cam)
    out_fast = jax.block_until_ready(
        se_like_forward(params, x_bf16, cam, bf16_matmul=True, out_dtype=jnp.bfloat16))
    assert out_fast.dtype == jnp.bfloat16
    out_fast_f32 = out_fast.astype(jnp.float32)
    assert jnp.allclose(out_fast_f32, ref_bf16_in, atol=3e-2, rtol=3e-2), \
        f"bf16 max abs err {jnp.max(jnp.abs(out_fast_f32 - ref_bf16_in))}"

    print("KERNEL_OK")
</pallas_src>

<mosaic_0001>
module attributes {stable_mosaic.version = 11 : i64} {
  func.func @_conv1x1_gate_kernel(%arg0: i32, %arg1: i32, %arg2: memref<1x64x256xf32, #tpu.memory_space<vmem>>, %arg3: memref<1x128x64xf32, #tpu.memory_space<vmem>>, %arg4: memref<1x128x1xf32, #tpu.memory_space<vmem>>, %arg5: memref<1x128x256xf32, #tpu.memory_space<vmem>>) attributes {dimension_semantics = [#tpu.dimension_semantics<parallel>, #tpu.dimension_semantics<parallel>], iteration_bounds = array<i64: 2, 1>, scalar_prefetch = 0 : i64, scratch_operands = 0 : i64, tpu.core_type = #tpu.core_type<tc>, window_params = [{transform_indices = @transform_0, window_bounds = array<i64: 1, 64, 256>}, {transform_indices = @transform_1, window_bounds = array<i64: 1, 128, 64>}, {transform_indices = @transform_2, window_bounds = array<i64: 1, 128, 1>}, {transform_indices = @transform_3, window_bounds = array<i64: 1, 128, 256>}]} {
    %c0 = arith.constant 0 : index
    %c0_0 = arith.constant 0 : index
    %c0_1 = arith.constant 0 : index
    %0 = vector.load %arg2[%c0, %c0_0, %c0_1] : memref<1x64x256xf32, #tpu.memory_space<vmem>>, vector<1x64x256xf32>
    %1 = vector.shape_cast %0 : vector<1x64x256xf32> to vector<64x256xf32>
    %c0_2 = arith.constant 0 : index
    %c0_3 = arith.constant 0 : index
    %c0_4 = arith.constant 0 : index
    %2 = vector.load %arg3[%c0_2, %c0_3, %c0_4] : memref<1x128x64xf32, #tpu.memory_space<vmem>>, vector<1x128x64xf32>
    %3 = vector.shape_cast %2 : vector<1x128x64xf32> to vector<128x64xf32>
    %cst = arith.constant dense<0.000000e+00> : vector<128x256xf32>
    %4 = tpu.matmul %3, %1, %cst {dimension_numbers = #tpu.dot_dimension_numbers<[1], [0], [0], [1], [0, 0, 1, 1], [], []>} : vector<128x64xf32>, vector<64x256xf32>, vector<128x256xf32> -> vector<128x256xf32>
    %c0_5 = arith.constant 0 : index
    %c0_6 = arith.constant 0 : index
    %c0_7 = arith.constant 0 : index
    %5 = vector.load %arg4[%c0_5, %c0_6, %c0_7] : memref<1x128x1xf32, #tpu.memory_space<vmem>>, vector<1x128x1xf32>
    %6 = vector.shape_cast %5 : vector<1x128x1xf32> to vector<128x1xf32>
    %7 = vector.broadcast %6 : vector<128x1xf32> to vector<128x256xf32>
    %8 = arith.addf %4, %7 : vector<128x256xf32>
    %c0_8 = arith.constant 0 : index
    %c0_9 = arith.constant 0 : index
    %c0_10 = arith.constant 0 : index
    %9 = vector.load %arg5[%c0_8, %c0_9, %c0_10] : memref<1x128x256xf32, #tpu.memory_space<vmem>>, vector<1x128x256xf32>
    %10 = vector.shape_cast %9 : vector<1x128x256xf32> to vector<128x256xf32>
    %11 = vector.shape_cast %8 : vector<128x256xf32> to vector<1x128x256xf32>
    tpu.vector_store %arg5[%c0_8, %c0_9, %c0_10], %11 {strides = array<i32>} : memref<1x128x256xf32, #tpu.memory_space<vmem>>, vector<1x128x256xf32>,
    return
  }
  func.func @transform_0(%arg0: i32, %arg1: i32) -> (i32, i32, i32) {
    %c0_i32 = arith.constant 0 : i32
    %c0_i32_0 = arith.constant 0 : i32
    return %arg0, %c0_i32, %arg1 : i32, i32, i32
  }
  func.func @transform_1(%arg0: i32, %arg1: i32) -> (i32, i32, i32) {
    %c0_i32 = arith.constant 0 : i32
    %c0_i32_0 = arith.constant 0 : i32
    %c0_i32_1 = arith.constant 0 : i32
    return %arg0, %c0_i32, %c0_i32_0 : i32, i32, i32
  }
  func.func @transform_2(%arg0: i32, %arg1: i32) -> (i32, i32, i32) {
    %c0_i32 = arith.constant 0 : i32
    %c0_i32_0 = arith.constant 0 : i32
    %c0_i32_1 = arith.constant 0 : i32
    return %arg0, %c0_i32, %c0_i32_0 : i32, i32, i32
  }
  func.func @transform_3(%arg0: i32, %arg1: i32) -> (i32, i32, i32) {
    %c0_i32 = arith.constant 0 : i32
    %c0_i32_0 = arith.constant 0 : i32
    return %arg0, %c0_i32, %arg1 : i32, i32, i32
  }
}

</mosaic_0001>

<bundles_post_ra>
// kernel: se_like_forward.1
= control target key start
LH: loop header
LB: loop body
LE: loop exit
PB: predicated region body
PF: predicated region fallthrough
CT: control target
= control target key end

     0   :  { %s856_s12 = smov 0   ;;  %s858_s13 = smov 0   ;;  %s1040_s0 = inlined_call_operand.vmem [shape: f32[2,64,256], index: 0, kind: input, shape index: {}]   ;;  %s1041_s1 = inlined_call_operand.vmem [shape: f32[2,128,64], index: 1, kind: input, shape index: {}]   ;;  %s1042_s2 = inlined_call_operand.vmem [shape: f32[2,128,1], index: 2, kind: input, shape index: {}]   ;;  %s1043_s3 = inlined_call_operand.vmem [shape: f32[2,128,256], index: 3, kind: output, shape index: {}]  }
   0x1   :  { %s860_s14 = smov 0  }
   0x2 LB: > { %s25_s15 = sadd.s32 1, %s828_s13  ;;  %p735_p0 = scmp.ge.s32.totalorder %s832_s14, 1  ;;  %s832_s14 = sphi %s860_s14, %s13_s14   ;;  %s828_s13 = sphi %s858_s13, %s1045_s13   ;;  %s824_s12 = sphi %s856_s12, %s1044_s12  }
   0x3   : > { %p27_p1 = scmp.ge.s32.totalorder %s25_s15, 2  ;;  %p178_p2 = scmp.lt.s32.totalorder %s832_s14, 3 }
   0x5   : > { %s1047_s15 = smov (%p27_p1, %s25_s15), 0  ;;  %p179_p3 = pnand %p735_p0, %p178_p2 }
   0x6   : > { %p221_p4 = scmp.lt.s32.totalorder (!%p179_p3), %s824_s12, 1 }
   0x7   : > { %182 = sbr.rel (%p179_p3) target bundleno = 258 (0x102), region = 32 }
   0xc   : > { %v834_v0 = vmov 0.0   ;;  %s1049_s12 = smov (!%p221_p4, %s824_s12), 1  ;;  %v835_v1 = vmov 0   ;;  %vm378_vm0 = vcmask 523264  }
   0xd   : > { %491 = vmatprep.mubr.f32.mxu0 %v834_v0  ;;  %539 = vmatprep.mubr.f32.mxu1 %v834_v0  ;;  %s879_s16 = sshll.u32 %s1049_s12, 7  ;;  %s765_s26 = sshll.u32 %s1049_s12, 8 }
   0xe   : > { %809 = vset.pattern.permute.xlu1 %v835_v1  ;;  %808 = vset.pattern.permute.xlu0 %v835_v1  ;;  %s885_s19 = scalar_lea.vmem %s1040_s0, %s879_s16  ;;  %s905_s22 = scalar_lea.vmem %s1041_s1, %s879_s16 }
   0xf   : > { %v265_v2 = vld [vmem:[%s885_s19 + $0x78] sm:$0xff]  ;;  %v264_v3 = vld [vmem:[%s885_s19 + $0x70] sm:$0xff]  ;;  %v263_v4 = vld [vmem:[%s885_s19 + $0x68] sm:$0xff]  ;;  %s913_s25 = scalar_lea.vmem %s1042_s2, %s879_s16  ;;  %s989_s29 = scalar_lea.vmem %s1043_s3, %s765_s26 }
  0x10   : > { %443 = vmatprep.subr.mxu0 %v265_v2  ;;  %766 = vmatprep.subr.mxu1 %v265_v2  ;;  %v262_v5 = vld [vmem:[%s885_s19 + $0x60] sm:$0xff]  ;;  %v261_v6 = vld [vmem:[%s885_s19 + $0x58] sm:$0xff]  ;;  %v260_v7 = vld [vmem:[%s885_s19 + $0x50] sm:$0xff] }
  0x11   : > { %444 = vmatpush1.msra.mxu0 %v264_v3  ;;  %774 = vmatpush1.msra.mxu1 %v264_v3  ;;  %v259_v8 = vld [vmem:[%s885_s19 + $0x48] sm:$0xff]  ;;  %v258_v9 = vld [vmem:[%s885_s19 + $0x40] sm:$0xff]  ;;  %v257_v10 = vld [vmem:[%s885_s19 + $0x38] sm:$0xff] }
  0x12   : > { %445 = vmatprep.subr.mxu0 %v263_v4  ;;  %767 = vmatprep.subr.mxu1 %v263_v4  ;;  %v256_v11 = vld [vmem:[%s885_s19 + $0x30] sm:$0xff]  ;;  %v255_v12 = vld [vmem:[%s885_s19 + $0x28] sm:$0xff]  ;;  %v254_v13 = vld [vmem:[%s885_s19 + $0x20] sm:$0xff] }
  0x13   : > { %446 = vmatpush1.msra.mxu0 %v262_v5  ;;  %775 = vmatpush1.msra.mxu1 %v262_v5  ;;  %v253_v14 = vld [vmem:[%s885_s19 + $0x18] sm:$0xff]  ;;  %v252_v15 = vld [vmem:[%s885_s19 + $0x10] sm:$0xff]  ;;  %v251_v16 = vld [vmem:[%s885_s19 + $0x8] sm:$0xff] }
  0x14   : > { %447 = vmatprep.subr.mxu0 %v261_v6  ;;  %768 = vmatprep.subr.mxu1 %v261_v6  ;;  %v250_v17 = vld [vmem:[%s885_s19] sm:$0xff]  ;;  %v284_v20 = vld [vmem:[%s913_s25 + $0x10] sm:$0xff]  ;;  %v267_v22 = vld [vmem:[%s905_s22 + $0x8] sm:$0xff] }
  0x15   : > { %448 = vmatpush1.msra.mxu0 %v260_v7  ;;  %776 = vmatpush1.msra.mxu1 %v260_v7  ;;  %v266_v18 = vld [vmem:[%s905_s22] sm:$0xff]  ;;  %v275_v23 = vld [vmem:[%s905_s22 + $0x48] sm:$0xff]  ;;  %v285_v24 = vld [vmem:[%s913_s25 + $0x18] sm:$0xff] }
  0x16   : > { %449 = vmatprep.subr.mxu0 %v259_v8  ;;  %769 = vmatprep.subr.mxu1 %v259_v8  ;;  %v274_v19 = vld [vmem:[%s905_s22 + $0x40] sm:$0xff]  ;;  %v283_v25 = vld [vmem:[%s913_s25 + $0x8] sm:$0xff]  ;;  %v268_v26 = vld [vmem:[%s905_s22 + $0x10] sm:$0xff] }
  0x17   : > { %450 = vmatpush1.msra.mxu0 %v258_v9  ;;  %777 = vmatpush1.msra.mxu1 %v258_v9  ;;  %v282_v21 = vld [vmem:[%s913_s25] sm:$0xff]  ;;  %v276_v27 = vld [vmem:[%s905_s22 + $0x50] sm:$0xff]  ;;  %v287_v28 = vld [vmem:[%s913_s25 + $0x28] sm:$0xff] }
  0x18   : > { %451 = vmatprep.subr.mxu0 %v257_v10  ;;  %770 = vmatprep.subr.mxu1 %v257_v10  ;;  %v286_v29 = vld [vmem:[%s913_s25 + $0x20] sm:$0xff]  ;;  %v269_v30 = vld [vmem:[%s905_s22 + $0x18] sm:$0xff]  ;;  %v288_v33 = vld [vmem:[%s913_s25 + $0x30] sm:$0xff] }
  0x19   : > { %452 = vmatpush1.msra.mxu0 %v256_v11  ;;  %778 = vmatpush1.msra.mxu1 %v256_v11  ;;  %v277_v31 = vld [vmem:[%s905_s22 + $0x58] sm:$0xff]  ;;  %v270_v34 = vld [vmem:[%s905_s22 + $0x20] sm:$0xff]  ;;  %v291_v36 = vld [vmem:[%s913_s25 + $0x48] sm:$0xff] }
  0x1a   : > { %453 = vmatprep.subr.mxu0 %v255_v12  ;;  %771 = vmatprep.subr.mxu1 %v255_v12  ;;  %v289_v32 = vld [vmem:[%s913_s25 + $0x38] sm:$0xff]  ;;  %v278_v35 = vld [vmem:[%s905_s22 + $0x60] sm:$0xff]  ;;  %v271_v38 = vld [vmem:[%s905_s22 + $0x28] sm:$0xff] }
  0x1b   : > { %454 = vmatpush1.msra.mxu0 %v254_v13  ;;  %779 = vmatpush1.msra.mxu1 %v254_v13  ;;  %v290_v37 = vld [vmem:[%s913_s25 + $0x40] sm:$0xff]  ;;  %v279_v39 = vld [vmem:[%s905_s22 + $0x68] sm:$0xff]  ;;  %v293_v40 = vld [vmem:[%s913_s25 + $0x58] sm:$0xff] }
  0x1c   : > { %455 = vmatprep.subr.mxu0 %v253_v14  ;;  %772 = vmatprep.subr.mxu1 %v253_v14  ;;  %v292_v41 = vld [vmem:[%s913_s25 + $0x50] sm:$0xff]  ;;  %v295_v44 = vld [vmem:[%s913_s25 + $0x68] sm:$0xff]  ;;  %v294_v45 = vld [vmem:[%s913_s25 + $0x60] sm:$0xff] }
  0x1d   : > { %456 = vmatpush1.msra.mxu0 %v252_v15  ;;  %780 = vmatpush1.msra.mxu1 %v252_v15  ;;  %v272_v42 = vld [vmem:[%s905_s22 + $0x30] sm:$0xff]  ;;  %v273_v46 = vld [vmem:[%s905_s22 + $0x38] sm:$0xff] }
  0x1e   : > { %457 = vmatprep.subr.mxu0 %v251_v16  ;;  %773 = vmatprep.subr.mxu1 %v251_v16  ;;  %v280_v43 = vld [vmem:[%s905_s22 + $0x70] sm:$0xff]  ;;  %v281_v47 = vld [vmem:[%s905_s22 + $0x78] sm:$0xff] }
  0x1f   : > { %458 = vmatpush1.msra.mxu0 %v250_v17  ;;  %781 = vmatpush1.msra.mxu1 %v250_v17  ;;  %v297_v48 = vld [vmem:[%s913_s25 + $0x78] sm:$0xff]  ;;  %v296_v49 = vld [vmem:[%s913_s25 + $0x70] sm:$0xff] }
  0x20   : > { %744 = vmatmul.mubr.msk.f32.vlgmr.msra.gmra.mxu0 %vm378_vm0, %v266_v18  ;;  %752 = vmatmul.mubr.msk.f32.vlgmr.msra.gmra.mxu1 %vm378_vm0, %v274_v19 }
  0x21   : > { %497 = vmatprep.mubr.f32.mxu0 %v834_v0  ;;  %545 = vmatprep.mubr.f32.mxu1 %v834_v0 }
  0x22   : > { %310 = vperm.xlu1 %809, %v284_v20   ;;  %300 = vperm.xlu0 %808, %v282_v21  }
  0x24   : > { %745 = vmatmul.mubr.msk.f32.gmra.mxu0 %vm378_vm0, %v267_v22  ;;  %753 = vmatmul.mubr.msk.f32.gmra.mxu1 %vm378_vm0, %v275_v23 }
  0x25   : > { %503 = vmatprep.mubr.f32.mxu0 %v834_v0  ;;  %551 = vmatprep.mubr.f32.mxu1 %v834_v0 }
  0x26   : > { %315 = vperm.xlu1 %809, %v285_v24   ;;  %305 = vperm.xlu0 %808, %v283_v25  }
  0x28   : > { %746 = vmatmul.mubr.msk.f32.gmra.mxu0 %vm378_vm0, %v268_v26  ;;  %754 = vmatmul.mubr.msk.f32.gmra.mxu1 %vm378_vm0, %v276_v27 }
  0x29   : > { %509 = vmatprep.mubr.f32.mxu0 %v834_v0  ;;  %557 = vmatprep.mubr.f32.mxu1 %v834_v0 }
  0x2a   : > { %325 = vperm.xlu1 %809, %v287_v28   ;;  %320 = vperm.xlu0 %808, %v286_v29  }
  0x2c   : > { %747 = vmatmul.mubr.msk.f32.gmra.mxu0 %vm378_vm0, %v269_v30  ;;  %755 = vmatmul.mubr.msk.f32.gmra.mxu1 %vm378_vm0, %v277_v31 }
  0x2d   : > { %515 = vmatprep.mubr.f32.mxu0 %v834_v0  ;;  %563 = vmatprep.mubr.f32.mxu1 %v834_v0 }
  0x2e   : > { %335 = vperm.xlu1 %809, %v289_v32   ;;  %330 = vperm.xlu0 %808, %v288_v33  }
  0x30   : > { %748 = vmatmul.mubr.msk.f32.gmra.mxu0 %vm378_vm0, %v270_v34  ;;  %756 = vmatmul.mubr.msk.f32.gmra.mxu1 %vm378_vm0, %v278_v35 }
  0x31   : > { %521 = vmatprep.mubr.f32.mxu0 %v834_v0  ;;  %569 = vmatprep.mubr.f32.mxu1 %v834_v0 }
  0x32   : > { %345 = vperm.xlu1 %809, %v291_v36   ;;  %340 = vperm.xlu0 %808, %v290_v37  }
  0x34   : > { %749 = vmatmul.mubr.msk.f32.gmra.mxu0 %vm378_vm0, %v271_v38  ;;  %757 = vmatmul.mubr.msk.f32.gmra.mxu1 %vm378_vm0, %v279_v39 }
  0x35   : > { %527 = vmatprep.mubr.f32.mxu0 %v834_v0  ;;  %575 = vmatprep.mubr.f32.mxu1 %v834_v0 }
  0x36   : > { %355 = vperm.xlu1 %809, %v293_v40   ;;  %350 = vperm.xlu0 %808, %v292_v41  }
  0x38   : > { %750 = vmatmul.mubr.msk.f32.gmra.mxu0 %vm378_vm0, %v272_v42  ;;  %758 = vmatmul.mubr.msk.f32.gmra.mxu1 %vm378_vm0, %v280_v43 }
  0x39   : > { %533 = vmatprep.mubr.f32.mxu0 %v834_v0  ;;  %581 = vmatprep.mubr.f32.mxu1 %v834_v0 }
  0x3a   : > { %365 = vperm.xlu1 %809, %v295_v44   ;;  %360 = vperm.xlu0 %808, %v294_v45  }
  0x3c   : > { %751 = vmatmul.mubr.msk.f32.gmra.mxu0 %vm378_vm0, %v273_v46  ;;  %759 = vmatmul.mubr.msk.f32.gmra.mxu1 %vm378_vm0, %v281_v47 }
  0x3e   : > { %375 = vperm.xlu1 %809, %v297_v48   ;;  %370 = vperm.xlu0 %808, %v296_v49  }
  0x9d   : > { %v301_v50 = vpop.permute.xlu0 %300  ;;  %v311_v51 = vpop.permute.xlu1 %310 }
  0xa1   : > { %v306_v52 = vpop.permute.xlu0 %305  ;;  %v316_v53 = vpop.permute.xlu1 %315 }
  0xa5   : > { %v977_v54 = vpop.permute.xlu0 %320  ;;  %v979_v55 = vpop.permute.xlu1 %325 }
  0xa9   : > { %v981_v56 = vpop.permute.xlu0 %330  ;;  %v984_v57 = vpop.permute.xlu1 %335 }
  0xad   : > { %v341_v58 = vpop.permute.xlu0 %340  ;;  %v346_v1 = vpop.permute.xlu1 %345 }
  0xb1   : > { %v351_v10 = vpop.permute.xlu0 %350  ;;  %v356_v19 = vpop.permute.xlu1 %355 }
  0xb5   : > { %v361_v28 = vpop.permute.xlu0 %360  ;;  %v366_v37 = vpop.permute.xlu1 %365 }
  0xb9   : > { %v371_v46 = vpop.permute.xlu0 %370 }
  0xe0   : > { %v493_v59 = vpop.f32.mrf.mxu0  ;;  %v541_v60 = vpop.f32.mrf.mxu1 }
  0xe1   : > { %v494_v61 = vadd.f32 %v493_v59, %v301_v50  ;;  %v542_v62 = vadd.f32 %v541_v60, %v341_v58 }
  0xe2   : > { %v495_v63 = vpop.f32.mrf.mxu0  ;;  %v543_v0 = vpop.f32.mrf.mxu1 }
  0xe3   : > { %588 = vst [vmem:[%s989_s29] sm:$0xff] %v494_v61  ;;  %604 = vst [vmem:[%s989_s29 + $0x80] sm:$0xff] %v542_v62  ;;  %v496_v2 = vadd.f32 %v495_v63, %v301_v50  ;;  %v544_v3 = vadd.f32 %v543_v0, %v341_v58  ;;  %v376_v58 = vpop.permute.xlu1 %375 }
  0xe4   : > { %v499_v4 = vpop.f32.mrf.mxu0  ;;  %v547_v5 = vpop.f32.mrf.mxu1 }
  0xe5   : > { %589 = vst [vmem:[%s989_s29 + $0x8] sm:$0xff] %v496_v2  ;;  %605 = vst [vmem:[%s989_s29 + $0x88] sm:$0xff] %v544_v3  ;;  %v500_v6 = vadd.f32 %v499_v4, %v306_v52  ;;  %v548_v7 = vadd.f32 %v547_v5, %v346_v1 }
  0xe6   : > { %v501_v8 = vpop.f32.mrf.mxu0  ;;  %v549_v9 = vpop.f32.mrf.mxu1 }
  0xe7   : > { %590 = vst [vmem:[%s989_s29 + $0x10] sm:$0xff] %v500_v6  ;;  %606 = vst [vmem:[%s989_s29 + $0x90] sm:$0xff] %v548_v7  ;;  %v502_v11 = vadd.f32 %v501_v8, %v306_v52  ;;  %v550_v12 = vadd.f32 %v549_v9, %v346_v1 }
  0xe8   : > { %v505_v13 = vpop.f32.mrf.mxu0  ;;  %v553_v14 = vpop.f32.mrf.mxu1 }
  0xe9   : > { %591 = vst [vmem:[%s989_s29 + $0x18] sm:$0xff] %v502_v11  ;;  %607 = vst [vmem:[%s989_s29 + $0x98] sm:$0xff] %v550_v12  ;;  %v506_v15 = vadd.f32 %v505_v13, %v311_v51  ;;  %v554_v16 = vadd.f32 %v553_v14, %v351_v10 }
  0xea   : > { %v507_v17 = vpop.f32.mrf.mxu0  ;;  %v555_v18 = vpop.f32.mrf.mxu1 }
  0xeb   : > { %592 = vst [vmem:[%s989_s29 + $0x20] sm:$0xff] %v506_v15  ;;  %608 = vst [vmem:[%s989_s29 + $0xa0] sm:$0xff] %v554_v16  ;;  %v508_v20 = vadd.f32 %v507_v17, %v311_v51  ;;  %v556_v21 = vadd.f32 %v555_v18, %v351_v10 }
  0xec   : > { %v511_v22 = vpop.f32.mrf.mxu0  ;;  %v559_v23 = vpop.f32.mrf.mxu1 }
  0xed   : > { %593 = vst [vmem:[%s989_s29 + $0x28] sm:$0xff] %v508_v20  ;;  %609 = vst [vmem:[%s989_s29 + $0xa8] sm:$0xff] %v556_v21  ;;  %v512_v24 = vadd.f32 %v511_v22, %v316_v53  ;;  %v560_v25 = vadd.f32 %v559_v23, %v356_v19 }
  0xee   : > { %v513_v26 = vpop.f32.mrf.mxu0  ;;  %v561_v27 = vpop.f32.mrf.mxu1 }
  0xef   : > { %594 = vst [vmem:[%s989_s29 + $0x30] sm:$0xff] %v512_v24  ;;  %610 = vst [vmem:[%s989_s29 + $0xb0] sm:$0xff] %v560_v25  ;;  %v514_v29 = vadd.f32 %v513_v26, %v316_v53  ;;  %v562_v30 = vadd.f32 %v561_v27, %v356_v19 }
  0xf0   : > { %v517_v31 = vpop.f32.mrf.mxu0  ;;  %v565_v32 = vpop.f32.mrf.mxu1 }
  0xf1   : > { %595 = vst [vmem:[%s989_s29 + $0x38] sm:$0xff] %v514_v29  ;;  %611 = vst [vmem:[%s989_s29 + $0xb8] sm:$0xff] %v562_v30  ;;  %v518_v33 = vadd.f32 %v517_v31, %v977_v54  ;;  %v566_v34 = vadd.f32 %v565_v32, %v361_v28 }
  0xf2   : > { %v519_v35 = vpop.f32.mrf.mxu0  ;;  %v567_v36 = vpop.f32.mrf.mxu1 }
  0xf3   : > { %596 = vst [vmem:[%s989_s29 + $0x40] sm:$0xff] %v518_v33  ;;  %612 = vst [vmem:[%s989_s29 + $0xc0] sm:$0xff] %v566_v34  ;;  %v520_v38 = vadd.f32 %v519_v35, %v977_v54  ;;  %v568_v39 = vadd.f32 %v567_v36, %v361_v28 }
  0xf4   : > { %v523_v40 = vpop.f32.mrf.mxu0  ;;  %v571_v41 = vpop.f32.mrf.mxu1 }
  0xf5   : > { %597 = vst [vmem:[%s989_s29 + $0x48] sm:$0xff] %v520_v38  ;;  %613 = vst [vmem:[%s989_s29 + $0xc8] sm:$0xff] %v568_v39  ;;  %v524_v42 = vadd.f32 %v523_v40, %v979_v55  ;;  %v572_v43 = vadd.f32 %v571_v41, %v366_v37 }
  0xf6   : > { %v525_v44 = vpop.f32.mrf.mxu0  ;;  %v573_v45 = vpop.f32.mrf.mxu1 }
  0xf7   : > { %598 = vst [vmem:[%s989_s29 + $0x50] sm:$0xff] %v524_v42  ;;  %614 = vst [vmem:[%s989_s29 + $0xd0] sm:$0xff] %v572_v43  ;;  %v526_v47 = vadd.f32 %v525_v44, %v979_v55  ;;  %v574_v48 = vadd.f32 %v573_v45, %v366_v37 }
  0xf8   : > { %v529_v49 = vpop.f32.mrf.mxu0  ;;  %v577_v50 = vpop.f32.mrf.mxu1 }
  0xf9   : > { %599 = vst [vmem:[%s989_s29 + $0x58] sm:$0xff] %v526_v47  ;;  %615 = vst [vmem:[%s989_s29 + $0xd8] sm:$0xff] %v574_v48  ;;  %v530_v51 = vadd.f32 %v529_v49, %v981_v56  ;;  %v578_v52 = vadd.f32 %v577_v50, %v371_v46 }
  0xfa   : > { %v531_v53 = vpop.f32.mrf.mxu0  ;;  %v579_v54 = vpop.f32.mrf.mxu1 }
  0xfb   : > { %600 = vst [vmem:[%s989_s29 + $0x60] sm:$0xff] %v530_v51  ;;  %616 = vst [vmem:[%s989_s29 + $0xe0] sm:$0xff] %v578_v52  ;;  %v532_v55 = vadd.f32 %v531_v53, %v981_v56  ;;  %v580_v59 = vadd.f32 %v579_v54, %v371_v46 }
  0xfc   : > { %v535_v60 = vpop.f32.mrf.mxu0  ;;  %v583_v61 = vpop.f32.mrf.mxu1 }
  0xfd   : > { %601 = vst [vmem:[%s989_s29 + $0x68] sm:$0xff] %v532_v55  ;;  %617 = vst [vmem:[%s989_s29 + $0xe8] sm:$0xff] %v580_v59  ;;  %v536_v62 = vadd.f32 %v535_v60, %v984_v57  ;;  %v584_v63 = vadd.f32 %v583_v61, %v376_v58 }
  0xfe   : > { %v537_v0 = vpop.f32.mrf.mxu0  ;;  %v585_v1 = vpop.f32.mrf.mxu1 }
  0xff   : > { %602 = vst [vmem:[%s989_s29 + $0x70] sm:$0xff] %v536_v62  ;;  %618 = vst [vmem:[%s989_s29 + $0xf0] sm:$0xff] %v584_v63  ;;  %v538_v2 = vadd.f32 %v537_v0, %v984_v57  ;;  %v586_v3 = vadd.f32 %v585_v1, %v376_v58 }
 0x101   : > { %603 = vst [vmem:[%s989_s29 + $0x78] sm:$0xff] %v538_v2  ;;  %619 = vst [vmem:[%s989_s29 + $0xf8] sm:$0xff] %v586_v3 }
 0x102 PF: > { %s13_s14 = sadd.s32 1, %s832_s14   ;;  %s1044_s12 = smov %s828_s13 }
 0x103   : > { %p10_p5 = scmp.ge.s32.totalorder %s13_s14, 4   ;;  %s1045_s13 = smov %s1047_s15 }
 0x105   :  { %12 = sbr.rel (!%p10_p5) target bundleno = 2 (0x2), region = 68 }

</bundles_post_ra>
